<compile_context>
chip_gen: v7x
topology: tpu7x:2x2x1
jax: 0.10.0
libtpu: 0.0.40
codegen_flags: <defaults>
</compile_context>

<pallas_src>
import functools

import numpy as np
import jax
import jax.numpy as jnp
from jax.experimental import pallas as pl
from jax.experimental.pallas import tpu as pltpu


_SUB = 8  # f32 sublane tile height


def _mdft_kernel(O, A, chunk, nchunks,
                 s_ref, cm_ref, cs_ref, w_ref, p_ref, n_ref, o_ref):
    """out = S @ prev_p + CM @ w + Cs @ noise on one sublane-dense column block.

    Constants (flattened, SMEM): s_ref (O*O,), cm_ref (O*A,), cs_ref (O*O,)
    Streamed VMEM blocks, sublane-dense (logical row r occupies sublanes
    [r*8, r*8+8) of the reshaped (R*8, N/8) array):
      w_ref (A*8, TN8), p_ref (O*8, TN8), n_ref (O*8, TN8), o_ref (O*8, TN8)
    """
    # Hoist the tiny constants out of the lane-chunk loop (scalar loads).
    s = [s_ref[k] for k in range(O * O)]
    cs = [cs_ref[k] for k in range(O * O)]
    cm = [cm_ref[k] for k in range(O * A)]

    def compute(col):
        # Load each input sublane-group once; fold into all O accumulators.
        acc = [None] * O
        for j in range(O):
            pj = p_ref[j * _SUB:(j + 1) * _SUB, col]
            for i in range(O):
                t = s[i * O + j] * pj
                acc[i] = t if acc[i] is None else acc[i] + t
        for j in range(O):
            nj = n_ref[j * _SUB:(j + 1) * _SUB, col]
            for i in range(O):
                acc[i] = acc[i] + cs[i * O + j] * nj
        for a in range(A):
            wa = w_ref[a * _SUB:(a + 1) * _SUB, col]
            for i in range(O):
                acc[i] = acc[i] + cm[i * A + a] * wa
        for i in range(O):
            o_ref[i * _SUB:(i + 1) * _SUB, col] = acc[i]  # full-tile, unmasked

    if nchunks == 1:
        compute(slice(None))
    else:
        @pl.loop(0, nchunks)
        def _(c):
            start = pl.multiple_of(c * chunk, chunk)
            compute(pl.ds(start, chunk))


def _pick_chunk(tn8, max_chunk):
    """Largest lane chunk <= max_chunk that exactly divides tn8."""
    if tn8 <= max_chunk:
        return tn8
    c = max(128, (max_chunk // 128) * 128)
    while c >= 128 and tn8 % c != 0:
        c -= 128
    return c if (c >= 128 and tn8 % c == 0) else tn8


@functools.partial(jax.jit, static_argnames=("tn", "lane_chunk"))
def mdft_forward(S, CM, Cs, w, prev_p, noise, *, tn=65536, lane_chunk=1024):
    """Pallas forward: S @ prev_p + CM @ w + Cs @ noise.

    S  : (options, options)      Cs = sig2 * C : (options, options)
    CM : (options, attrs)        (all small constants, host-built)
    w      : (attrs,   n_samples)
    prev_p : (options, n_samples)
    noise  : (options, n_samples)  pre-generated standard-normal samples
    tn         : logical columns per grid step (MB-scale to amortize step cost)
    lane_chunk : lanes per in-kernel chunk (bounds vreg live ranges)
    """
    S = jnp.asarray(S, jnp.float32)
    CM = jnp.asarray(CM, jnp.float32)
    Cs = jnp.asarray(Cs, jnp.float32)
    w = jnp.asarray(w, jnp.float32)
    prev_p = jnp.asarray(prev_p, jnp.float32)
    noise = jnp.asarray(noise, jnp.float32)

    O, A = CM.shape
    N = prev_p.shape[1]

    # Pad the sample axis to a multiple of 8 so the sublane-dense reshape
    # (R, N) -> (R*8, N/8) is a pure row-major relabelling.
    Np = ((N + _SUB - 1) // _SUB) * _SUB
    if Np != N:
        pad = ((0, 0), (0, Np - N))
        w = jnp.pad(w, pad)
        prev_p = jnp.pad(prev_p, pad)
        noise = jnp.pad(noise, pad)
    n8 = Np // _SUB

    w8 = w.reshape(A * _SUB, n8)
    p8 = prev_p.reshape(O * _SUB, n8)
    e8 = noise.reshape(O * _SUB, n8)

    # Column-tile sizing (lanes of the reshaped arrays).
    tn8_req = max(128, (tn // _SUB // 128) * 128)
    if n8 <= tn8_req:
        tn8 = n8  # single full-width block (legal: equals full array dim)
    else:
        # Keep >= ~4 grid steps so the "parallel" axis gives both v7x TCs work.
        quarter = max(128, (pl.cdiv(n8, 4) // 128) * 128)
        tn8 = min(tn8_req, quarter)
    grid = (pl.cdiv(n8, tn8),)

    chunk = _pick_chunk(tn8, lane_chunk)
    nchunks = tn8 // chunk

    smem = pl.BlockSpec(memory_space=pltpu.MemorySpace.SMEM)

    def col_block(rows):
        return pl.BlockSpec((rows, tn8), lambda i: (0, i))

    out8 = pl.pallas_call(
        functools.partial(_mdft_kernel, O, A, chunk, nchunks),
        out_shape=jax.ShapeDtypeStruct((O * _SUB, n8), jnp.float32),
        grid=grid,
        in_specs=[smem, smem, smem,        # S, CM, Cs (flattened, tiny)
                  col_block(A * _SUB),     # w   (sublane-dense)
                  col_block(O * _SUB),     # prev_p
                  col_block(O * _SUB)],    # noise
        out_specs=col_block(O * _SUB),
        compiler_params=pltpu.CompilerParams(
            dimension_semantics=("parallel",)),
    )(S.reshape(-1), CM.reshape(-1), Cs.reshape(-1), w8, p8, e8)

    out = out8.reshape(O, Np)
    return out[:, :N] if Np != N else out


# ---------- parameter construction (host-side glue; mirrors MDFT_Net.__init__) ----------
def _inv_B(attr_count):
    n = attr_count
    ib = -np.ones((n, n), np.float32)
    for i in range(1, n):
        ib[i - 1, i] = n - 1
    ib[-1, :] = 1.0
    return ib / np.sqrt(n)


def build_params(M, b, phi1, phi2, sig2, options_count, attr_count):
    """Numpy construction of the constant matrices + the folding the kernel uses."""
    B = _inv_B(attr_count)
    A = np.eye(attr_count, dtype=np.float32)
    A[-1, -1] = b
    H = B @ A @ B.T                                      # self.H

    C = np.full((options_count, options_count),
                -1.0 / (options_count - 1), np.float32)  # self.C
    np.fill_diagonal(C, 1.0)

    M = np.asarray(M, np.float32)
    dm = M[None, :, :] - M[:, None, :]                   # dm[i, j] = M[j] - M[i]
    # matches __S: d = (dm @ H @ dm.T) ** 2
    d = np.einsum("ija,ab,ijb->ij", dm, H, dm) ** 2
    s = phi2 * np.exp(-phi1 * d)
    S = -s + np.eye(options_count, dtype=np.float32)     # diag: 1 - s, off-diag: -s

    CM = C @ M                                           # folded: C @ M
    Cs = np.float32(sig2) * C                            # folded: sig2 * C
    return C, H, S, CM, Cs


if __name__ == "__main__":
    # default MDFT_Net options
    options_count, attr_count = 3, 2
    b, phi1, phi2, sig2 = 10.0, 1.0, 1.0, 1.0

    key = jax.random.PRNGKey(0)
    kM, kdata = jax.random.split(key)
    M = jax.random.normal(kM, (options_count, attr_count), jnp.float32)

    C, H, S, CM, Cs = build_params(np.asarray(M), b, phi1, phi2, sig2,
                                   options_count, attr_count)

    # (n_samples, tn, lane_chunk): tiny single block / pad path (N % 8 != 0) /
    # multi-step grid with ragged last block / multi-step grid + multi-chunk loop.
    cases = (
        (8, 65536, 1024),
        (250, 65536, 1024),
        (5000, 2048, 1024),
        (8192, 4096, 128),
    )
    for n_samples, tn, lane_chunk in cases:
        kw_i, kp_i, ke_i = jax.random.split(jax.random.fold_in(kdata, n_samples), 3)
        w = jax.random.normal(kw_i, (attr_count, n_samples), jnp.float32)
        prev_p = jax.random.normal(kp_i, (options_count, n_samples), jnp.float32)
        # torch.randn(...) inside forward -> deterministic JAX noise passed in.
        noise = jax.random.normal(ke_i, (options_count, n_samples), jnp.float32)

        out = mdft_forward(S, CM, Cs, w, prev_p, noise, tn=tn, lane_chunk=lane_chunk)
        out = jax.block_until_ready(out)

        # pure numpy reference of the original forward pass
        ref = (np.asarray(S) @ np.asarray(prev_p)
               + (np.asarray(C) @ np.asarray(M)) @ np.asarray(w)
               + sig2 * (np.asarray(C) @ np.asarray(noise)))
        np.testing.assert_allclose(np.asarray(out), ref, rtol=1e-5, atol=1e-5)

    print("KERNEL_OK")
</pallas_src>

<mosaic_0001>
module attributes {stable_mosaic.version = 11 : i64} {
  func.func @_mdft_kernel(%arg0: i32, %arg1: memref<9xf32, #tpu.memory_space<smem>>, %arg2: memref<6xf32, #tpu.memory_space<smem>>, %arg3: memref<9xf32, #tpu.memory_space<smem>>, %arg4: memref<16x1xf32, #tpu.memory_space<vmem>>, %arg5: memref<24x1xf32, #tpu.memory_space<vmem>>, %arg6: memref<24x1xf32, #tpu.memory_space<vmem>>, %arg7: memref<24x1xf32, #tpu.memory_space<vmem>>) attributes {dimension_semantics = [#tpu.dimension_semantics<parallel>], iteration_bounds = array<i64: 1>, scalar_prefetch = 0 : i64, scratch_operands = 0 : i64, tpu.core_type = #tpu.core_type<tc>, window_params = [{transform_indices = @transform_0, window_bounds = array<i64: 9>}, {transform_indices = @transform_1, window_bounds = array<i64: 6>}, {transform_indices = @transform_2, window_bounds = array<i64: 9>}, {transform_indices = @transform_3, window_bounds = array<i64: 16, 1>}, {transform_indices = @transform_4, window_bounds = array<i64: 24, 1>}, {transform_indices = @transform_5, window_bounds = array<i64: 24, 1>}, {transform_indices = @transform_6, window_bounds = array<i64: 24, 1>}]} {
    %c0 = arith.constant 0 : index
    %0 = memref.load %arg1[%c0] : memref<9xf32, #tpu.memory_space<smem>>
    %c1 = arith.constant 1 : index
    %1 = memref.load %arg1[%c1] : memref<9xf32, #tpu.memory_space<smem>>
    %c2 = arith.constant 2 : index
    %2 = memref.load %arg1[%c2] : memref<9xf32, #tpu.memory_space<smem>>
    %c3 = arith.constant 3 : index
    %3 = memref.load %arg1[%c3] : memref<9xf32, #tpu.memory_space<smem>>
    %c4 = arith.constant 4 : index
    %4 = memref.load %arg1[%c4] : memref<9xf32, #tpu.memory_space<smem>>
    %c5 = arith.constant 5 : index
    %5 = memref.load %arg1[%c5] : memref<9xf32, #tpu.memory_space<smem>>
    %c6 = arith.constant 6 : index
    %6 = memref.load %arg1[%c6] : memref<9xf32, #tpu.memory_space<smem>>
    %c7 = arith.constant 7 : index
    %7 = memref.load %arg1[%c7] : memref<9xf32, #tpu.memory_space<smem>>
    %c8 = arith.constant 8 : index
    %8 = memref.load %arg1[%c8] : memref<9xf32, #tpu.memory_space<smem>>
    %c0_0 = arith.constant 0 : index
    %9 = memref.load %arg3[%c0_0] : memref<9xf32, #tpu.memory_space<smem>>
    %c1_1 = arith.constant 1 : index
    %10 = memref.load %arg3[%c1_1] : memref<9xf32, #tpu.memory_space<smem>>
    %c2_2 = arith.constant 2 : index
    %11 = memref.load %arg3[%c2_2] : memref<9xf32, #tpu.memory_space<smem>>
    %c3_3 = arith.constant 3 : index
    %12 = memref.load %arg3[%c3_3] : memref<9xf32, #tpu.memory_space<smem>>
    %c4_4 = arith.constant 4 : index
    %13 = memref.load %arg3[%c4_4] : memref<9xf32, #tpu.memory_space<smem>>
    %c5_5 = arith.constant 5 : index
    %14 = memref.load %arg3[%c5_5] : memref<9xf32, #tpu.memory_space<smem>>
    %c6_6 = arith.constant 6 : index
    %15 = memref.load %arg3[%c6_6] : memref<9xf32, #tpu.memory_space<smem>>
    %c7_7 = arith.constant 7 : index
    %16 = memref.load %arg3[%c7_7] : memref<9xf32, #tpu.memory_space<smem>>
    %c8_8 = arith.constant 8 : index
    %17 = memref.load %arg3[%c8_8] : memref<9xf32, #tpu.memory_space<smem>>
    %c0_9 = arith.constant 0 : index
    %18 = memref.load %arg2[%c0_9] : memref<6xf32, #tpu.memory_space<smem>>
    %c1_10 = arith.constant 1 : index
    %19 = memref.load %arg2[%c1_10] : memref<6xf32, #tpu.memory_space<smem>>
    %c2_11 = arith.constant 2 : index
    %20 = memref.load %arg2[%c2_11] : memref<6xf32, #tpu.memory_space<smem>>
    %c3_12 = arith.constant 3 : index
    %21 = memref.load %arg2[%c3_12] : memref<6xf32, #tpu.memory_space<smem>>
    %c4_13 = arith.constant 4 : index
    %22 = memref.load %arg2[%c4_13] : memref<6xf32, #tpu.memory_space<smem>>
    %c5_14 = arith.constant 5 : index
    %23 = memref.load %arg2[%c5_14] : memref<6xf32, #tpu.memory_space<smem>>
    %c0_15 = arith.constant 0 : index
    %c0_16 = arith.constant 0 : index
    %24 = vector.load %arg5[%c0_15, %c0_16] : memref<24x1xf32, #tpu.memory_space<vmem>>, vector<8x1xf32>
    %25 = vector.broadcast %0 : f32 to vector<8x1xf32>
    %26 = arith.mulf %25, %24 : vector<8x1xf32>
    %27 = vector.broadcast %3 : f32 to vector<8x1xf32>
    %28 = arith.mulf %27, %24 : vector<8x1xf32>
    %29 = vector.broadcast %6 : f32 to vector<8x1xf32>
    %30 = arith.mulf %29, %24 : vector<8x1xf32>
    %c8_17 = arith.constant 8 : index
    %c0_18 = arith.constant 0 : index
    %31 = vector.load %arg5[%c8_17, %c0_18] : memref<24x1xf32, #tpu.memory_space<vmem>>, vector<8x1xf32>
    %32 = vector.broadcast %1 : f32 to vector<8x1xf32>
    %33 = arith.mulf %32, %31 : vector<8x1xf32>
    %34 = arith.addf %26, %33 : vector<8x1xf32>
    %35 = vector.broadcast %4 : f32 to vector<8x1xf32>
    %36 = arith.mulf %35, %31 : vector<8x1xf32>
    %37 = arith.addf %28, %36 : vector<8x1xf32>
    %38 = vector.broadcast %7 : f32 to vector<8x1xf32>
    %39 = arith.mulf %38, %31 : vector<8x1xf32>
    %40 = arith.addf %30, %39 : vector<8x1xf32>
    %c16 = arith.constant 16 : index
    %c0_19 = arith.constant 0 : index
    %41 = vector.load %arg5[%c16, %c0_19] : memref<24x1xf32, #tpu.memory_space<vmem>>, vector<8x1xf32>
    %42 = vector.broadcast %2 : f32 to vector<8x1xf32>
    %43 = arith.mulf %42, %41 : vector<8x1xf32>
    %44 = arith.addf %34, %43 : vector<8x1xf32>
    %45 = vector.broadcast %5 : f32 to vector<8x1xf32>
    %46 = arith.mulf %45, %41 : vector<8x1xf32>
    %47 = arith.addf %37, %46 : vector<8x1xf32>
    %48 = vector.broadcast %8 : f32 to vector<8x1xf32>
    %49 = arith.mulf %48, %41 : vector<8x1xf32>
    %50 = arith.addf %40, %49 : vector<8x1xf32>
    %c0_20 = arith.constant 0 : index
    %c0_21 = arith.constant 0 : index
    %51 = vector.load %arg6[%c0_20, %c0_21] : memref<24x1xf32, #tpu.memory_space<vmem>>, vector<8x1xf32>
    %52 = vector.broadcast %9 : f32 to vector<8x1xf32>
    %53 = arith.mulf %52, %51 : vector<8x1xf32>
    %54 = arith.addf %44, %53 : vector<8x1xf32>
    %55 = vector.broadcast %12 : f32 to vector<8x1xf32>
    %56 = arith.mulf %55, %51 : vector<8x1xf32>
    %57 = arith.addf %47, %56 : vector<8x1xf32>
    %58 = vector.broadcast %15 : f32 to vector<8x1xf32>
    %59 = arith.mulf %58, %51 : vector<8x1xf32>
    %60 = arith.addf %50, %59 : vector<8x1xf32>
    %c8_22 = arith.constant 8 : index
    %c0_23 = arith.constant 0 : index
    %61 = vector.load %arg6[%c8_22, %c0_23] : memref<24x1xf32, #tpu.memory_space<vmem>>, vector<8x1xf32>
    %62 = vector.broadcast %10 : f32 to vector<8x1xf32>
    %63 = arith.mulf %62, %61 : vector<8x1xf32>
    %64 = arith.addf %54, %63 : vector<8x1xf32>
    %65 = vector.broadcast %13 : f32 to vector<8x1xf32>
    %66 = arith.mulf %65, %61 : vector<8x1xf32>
    %67 = arith.addf %57, %66 : vector<8x1xf32>
    %68 = vector.broadcast %16 : f32 to vector<8x1xf32>
    %69 = arith.mulf %68, %61 : vector<8x1xf32>
    %70 = arith.addf %60, %69 : vector<8x1xf32>
    %c16_24 = arith.constant 16 : index
    %c0_25 = arith.constant 0 : index
    %71 = vector.load %arg6[%c16_24, %c0_25] : memref<24x1xf32, #tpu.memory_space<vmem>>, vector<8x1xf32>
    %72 = vector.broadcast %11 : f32 to vector<8x1xf32>
    %73 = arith.mulf %72, %71 : vector<8x1xf32>
    %74 = arith.addf %64, %73 : vector<8x1xf32>
    %75 = vector.broadcast %14 : f32 to vector<8x1xf32>
    %76 = arith.mulf %75, %71 : vector<8x1xf32>
    %77 = arith.addf %67, %76 : vector<8x1xf32>
    %78 = vector.broadcast %17 : f32 to vector<8x1xf32>
    %79 = arith.mulf %78, %71 : vector<8x1xf32>
    %80 = arith.addf %70, %79 : vector<8x1xf32>
    %c0_26 = arith.constant 0 : index
    %c0_27 = arith.constant 0 : index
    %81 = vector.load %arg4[%c0_26, %c0_27] : memref<16x1xf32, #tpu.memory_space<vmem>>, vector<8x1xf32>
    %82 = vector.broadcast %18 : f32 to vector<8x1xf32>
    %83 = arith.mulf %82, %81 : vector<8x1xf32>
    %84 = arith.addf %74, %83 : vector<8x1xf32>
    %85 = vector.broadcast %20 : f32 to vector<8x1xf32>
    %86 = arith.mulf %85, %81 : vector<8x1xf32>
    %87 = arith.addf %77, %86 : vector<8x1xf32>
    %88 = vector.broadcast %22 : f32 to vector<8x1xf32>
    %89 = arith.mulf %88, %81 : vector<8x1xf32>
    %90 = arith.addf %80, %89 : vector<8x1xf32>
    %c8_28 = arith.constant 8 : index
    %c0_29 = arith.constant 0 : index
    %91 = vector.load %arg4[%c8_28, %c0_29] : memref<16x1xf32, #tpu.memory_space<vmem>>, vector<8x1xf32>
    %92 = vector.broadcast %19 : f32 to vector<8x1xf32>
    %93 = arith.mulf %92, %91 : vector<8x1xf32>
    %94 = arith.addf %84, %93 : vector<8x1xf32>
    %95 = vector.broadcast %21 : f32 to vector<8x1xf32>
    %96 = arith.mulf %95, %91 : vector<8x1xf32>
    %97 = arith.addf %87, %96 : vector<8x1xf32>
    %98 = vector.broadcast %23 : f32 to vector<8x1xf32>
    %99 = arith.mulf %98, %91 : vector<8x1xf32>
    %100 = arith.addf %90, %99 : vector<8x1xf32>
    %c0_30 = arith.constant 0 : index
    %c0_31 = arith.constant 0 : index
    %101 = vector.load %arg7[%c0_30, %c0_31] : memref<24x1xf32, #tpu.memory_space<vmem>>, vector<8x1xf32>
    tpu.vector_store %arg7[%c0_30, %c0_31], %94 {strides = array<i32>} : memref<24x1xf32, #tpu.memory_space<vmem>>, vector<8x1xf32>,
    %c8_32 = arith.constant 8 : index
    %c0_33 = arith.constant 0 : index
    %102 = vector.load %arg7[%c8_32, %c0_33] : memref<24x1xf32, #tpu.memory_space<vmem>>, vector<8x1xf32>
    tpu.vector_store %arg7[%c8_32, %c0_33], %97 {strides = array<i32>} : memref<24x1xf32, #tpu.memory_space<vmem>>, vector<8x1xf32>,
    %c16_34 = arith.constant 16 : index
    %c0_35 = arith.constant 0 : index
    %103 = vector.load %arg7[%c16_34, %c0_35] : memref<24x1xf32, #tpu.memory_space<vmem>>, vector<8x1xf32>
    tpu.vector_store %arg7[%c16_34, %c0_35], %100 {strides = array<i32>} : memref<24x1xf32, #tpu.memory_space<vmem>>, vector<8x1xf32>,
    return
  }
  func.func @transform_0(%arg0: i32) -> i32 {
    %c0_i32 = arith.constant 0 : i32
    %c0_i32_0 = arith.constant 0 : i32
    return %c0_i32 : i32
  }
  func.func @transform_1(%arg0: i32) -> i32 {
    %c0_i32 = arith.constant 0 : i32
    %c0_i32_0 = arith.constant 0 : i32
    return %c0_i32 : i32
  }
  func.func @transform_2(%arg0: i32) -> i32 {
    %c0_i32 = arith.constant 0 : i32
    %c0_i32_0 = arith.constant 0 : i32
    return %c0_i32 : i32
  }
  func.func @transform_3(%arg0: i32) -> (i32, i32) {
    %c0_i32 = arith.constant 0 : i32
    %c0_i32_0 = arith.constant 0 : i32
    return %c0_i32, %arg0 : i32, i32
  }
  func.func @transform_4(%arg0: i32) -> (i32, i32) {
    %c0_i32 = arith.constant 0 : i32
    %c0_i32_0 = arith.constant 0 : i32
    return %c0_i32, %arg0 : i32, i32
  }
  func.func @transform_5(%arg0: i32) -> (i32, i32) {
    %c0_i32 = arith.constant 0 : i32
    %c0_i32_0 = arith.constant 0 : i32
    return %c0_i32, %arg0 : i32, i32
  }
  func.func @transform_6(%arg0: i32) -> (i32, i32) {
    %c0_i32 = arith.constant 0 : i32
    %c0_i32_0 = arith.constant 0 : i32
    return %c0_i32, %arg0 : i32, i32
  }
}

</mosaic_0001>

<bundles_post_ra>
// kernel: mdft_forward.1
= control target key start
LH: loop header
LB: loop body
LE: loop exit
PB: predicated region body
PF: predicated region fallthrough
CT: control target
= control target key end

     0   :  { %11 = vsyncpa [#allocation3], 0  ;;  %s410_s0 = inlined_call_operand.vmem [shape: f32[9], index: 0, kind: input, shape index: {}]   ;;  %s411_s1 = inlined_call_operand.vmem [shape: f32[6], index: 1, kind: input, shape index: {}]   ;;  %s412_s2 = inlined_call_operand.vmem [shape: f32[9], index: 2, kind: input, shape index: {}]   ;;  %s413_s3 = inlined_call_operand.vmem [shape: f32[16,1], index: 3, kind: input, shape index: {}]   ;;  %s414_s4 = inlined_call_operand.vmem [shape: f32[24,1], index: 4, kind: input, shape index: {}]   ;;  %s415_s5 = inlined_call_operand.vmem [shape: f32[24,1], index: 5, kind: input, shape index: {}]   ;;  %s416_s6 = inlined_call_operand.vmem [shape: f32[24,1], index: 6, kind: output, shape index: {}]  }
   0x1   :  { %12 = vsyncpa [#allocation5], 0  ;;  %s29_s23 = sshll.u32 %s411_s1, 4  ;;  %s19_s26 = sshll.u32 %s410_s0, 4  ;;  %s30_s23 = int_to_ptr.vmem [resolvable:$true] %s29_s23  ;;  %s20_s26 = int_to_ptr.vmem [resolvable:$true] %s19_s26 }
   0x2   :  { %s194_s27 = scalar_lea.vmem %s30_s23, 16  ;;  %p199_p1 = scmp.lt.s32.totalorder %s30_s23, %s30_s23 }
   0x3   :  { %p195_p0 = scmp.ne.s32.totalorder %s30_s23, %s194_s27  ;;  %p200_p2 = scmp.lt.s32.totalorder %s194_s27, %s194_s27 }
   0x5   :  { %p201_p3 = por %p200_p2, %p199_p1 }
   0x7   :  { %p202_p4 = pnand %p201_p3, %p195_p0 }
   0x9   :  { %205 = shalt.err (!%p202_p4)
}
   0xa   :  { %s234_s28 = smov [#allocation4]   ;;  %s206_s29 = scalar_lea.vmem %s20_s26, 16 }
   0xb   :  { %32 = dma.vmem_to_smem %s30_s23, 16, %s234_s28, [#allocation5]  }
   0xc   :  { %p207_p5 = scmp.ne.s32.totalorder %s20_s26, %s206_s29  ;;  %p211_p6 = scmp.lt.s32.totalorder %s20_s26, %s20_s26 }
   0xd   :  { %p212_p7 = scmp.lt.s32.totalorder %s206_s29, %s206_s29 }
   0xf   :  { %p213_p8 = por %p212_p7, %p211_p6 }
  0x11   :  { %p214_p9 = pnand %p213_p8, %p207_p5 }
  0x13   :  { %217 = shalt.err (!%p214_p9)
}
  0x14   :  { %s235_s1 = smov [#allocation2]   ;;  %s39_s7 = sshll.u32 %s412_s2, 4  ;;  %s40_s7 = int_to_ptr.vmem [resolvable:$true] %s39_s7 }
  0x15   :  { %22 = dma.vmem_to_smem %s20_s26, 16, %s235_s1, [#allocation3]  }
  0x16   :  { %s218_s8 = scalar_lea.vmem %s40_s7, 16  ;;  %p223_p11 = scmp.lt.s32.totalorder %s40_s7, %s40_s7 }
  0x17   :  { %p219_p10 = scmp.ne.s32.totalorder %s40_s7, %s218_s8  ;;  %p224_p12 = scmp.lt.s32.totalorder %s218_s8, %s218_s8 }
  0x19   :  { %p225_p13 = por %p224_p12, %p223_p11 }
  0x1b   :  { %p226_p0 = pnand %p225_p13, %p219_p10 }
  0x1d   :  { %229 = shalt.err (!%p226_p0)
}
  0x1e   :  { %s236_s9 = smov [#allocation6]  }
  0x1f   :  { %42 = dma.vmem_to_smem %s40_s7, 16, %s236_s9, [#allocation5]  }
  0x20   :  { %230 = dma.done.wait [#allocation3], 16  }
  0x21   :  { %231 = vsyncadd [#allocation3], 4294967280 }
  0x22   :  { %232 = dma.done.wait [#allocation5], 32  }
  0x23   :  { %233 = vsyncadd [#allocation5], 4294967264 }
  0x24   :  { %58 = sfence }
  0x25   :  { %s59_s10 = sld [smem:[#allocation2]]  ;;  %s170_s11 = sld [smem:[#allocation2 + $0x1]]  ;;  %v294_v0 = vld [vmem:[%s414_s4] sm:$0xff]  ;;  %v299_v1 = vld [vmem:[%s414_s4 + $0x8] sm:$0xff]  ;;  %v308_v2 = vld [vmem:[%s414_s4 + $0x10] sm:$0xff]  ;;  %vm160_vm0 = vcmask 7168  }
  0x26   :  { %s171_s12 = sld [smem:[#allocation2 + $0x2]]  ;;  %s281_s13 = sld [smem:[#allocation6]]  ;;  %v317_v5 = vld [vmem:[%s415_s5] sm:$0xff]  ;;  %v322_v6 = vld [vmem:[%s415_s5 + $0x8] sm:$0xff]  ;;  %v334_v11 = vld [vmem:[%s415_s5 + $0x10] sm:$0xff] }
  0x27   :  { %s283_s2 = sld [smem:[#allocation6 + $0x1]]  ;;  %s285_s14 = sld [smem:[#allocation6 + $0x2]]  ;;  %v140_v23 = vld [vmem:[%s413_s3] sm:$0xff]  ;;  %v150_v24 = vld [vmem:[%s413_s3 + $0x8] sm:$0xff] }
  0x28   :  { %s287_s15 = sld [smem:[#allocation4]]  ;;  %s289_s16 = sld [smem:[#allocation4 + $0x1]] }
  0x29   :  { %s301_s21 = sld [smem:[#allocation2 + $0x3]]  ;;  %s303_s22 = sld [smem:[#allocation2 + $0x4]] }
  0x2a   :  { %s310_s25 = sld [smem:[#allocation2 + $0x5]]  ;;  %s312_s26 = sld [smem:[#allocation6 + $0x3]] }
  0x2b   :  { %v84_v3 = vstv %s59_s10  ;;  %v91_v4 = vstv %s170_s11  ;;  %s324_s4 = sld [smem:[#allocation6 + $0x4]]  ;;  %s326_s0 = sld [smem:[#allocation6 + $0x5]] }
  0x2c   :  { %v85_v7 = vmul.f32 %v84_v3, %v294_v0  ;;  %v92_v8 = vmul.f32 %v91_v4, %v299_v1  ;;  %v101_v9 = vstv %s171_s12  ;;  %v111_v10 = vstv %s281_s13  ;;  %s336_s8 = sld [smem:[#allocation4 + $0x2]]  ;;  %s338_s9 = sld [smem:[#allocation4 + $0x3]] }
  0x2d   :  { %v102_v12 = vmul.f32 %v101_v9, %v308_v2  ;;  %v121_v13 = vstv %s283_s2  ;;  %v131_v14 = vstv %s285_s14  ;;  %s343_s10 = sld [smem:[#allocation2 + $0x6]]  ;;  %s345_s11 = sld [smem:[#allocation2 + $0x7]]  ;;  %v112_v16 = vmul.f32 %v111_v10, %v317_v5 }
  0x2e   :  { %v93_v15 = vadd.f32 %v92_v8, %v85_v7  ;;  %v122_v17 = vmul.f32 %v121_v13, %v322_v6  ;;  %s349_s5 = sld [smem:[#allocation2 + $0x8]]  ;;  %s351_s12 = sld [smem:[#allocation6 + $0x6]]  ;;  %v132_v18 = vmul.f32 %v131_v14, %v334_v11  ;;  %v141_v19 = vstv %s287_s15 }
  0x2f   :  { %v86_v20 = vstv %s301_s21  ;;  %v94_v21 = vstv %s303_s22  ;;  %s357_s13 = sld [smem:[#allocation6 + $0x7]]  ;;  %v151_v25 = vstv %s289_s16  ;;  %s372_s15 = sld [smem:[#allocation6 + $0x8]]  ;;  %v142_v36 = vmul.f32 %v141_v19, %v140_v23 }
  0x30   :  { %v103_v22 = vadd.f32 %v102_v12, %v93_v15  ;;  %v87_v26 = vmul.f32 %v86_v20, %v294_v0  ;;  %v95_v27 = vmul.f32 %v94_v21, %v299_v1  ;;  %v104_v28 = vstv %s310_s25  ;;  %s378_s3 = sld [smem:[#allocation4 + $0x4]]  ;;  %s382_s16 = sld [smem:[#allocation4 + $0x5]] }
  0x31   :  { %v114_v29 = vstv %s312_s26  ;;  %v124_v30 = vstv %s324_s4  ;;  %v134_v31 = vstv %s326_s0  ;;  %v105_v34 = vmul.f32 %v104_v28, %v308_v2 }
  0x32   :  { %v113_v32 = vadd.f32 %v112_v16, %v103_v22  ;;  %v96_v33 = vadd.f32 %v95_v27, %v87_v26  ;;  %v115_v35 = vmul.f32 %v114_v29, %v317_v5  ;;  %v152_v37 = vmul.f32 %v151_v25, %v150_v24 }
  0x33   :  { %v125_v38 = vmul.f32 %v124_v30, %v322_v6  ;;  %v135_v39 = vmul.f32 %v134_v31, %v334_v11  ;;  %v144_v42 = vstv %s336_s8  ;;  %v154_v43 = vstv %s338_s9 }
  0x34   :  { %v123_v40 = vadd.f32 %v122_v17, %v113_v32  ;;  %v106_v41 = vadd.f32 %v105_v34, %v96_v33  ;;  %v88_v44 = vstv %s343_s10  ;;  %v97_v45 = vstv %s345_s11 }
  0x35   :  { %v107_v46 = vstv %s349_s5  ;;  %v117_v47 = vstv %s351_s12  ;;  %v89_v50 = vmul.f32 %v88_v44, %v294_v0  ;;  %v98_v51 = vmul.f32 %v97_v45, %v299_v1 }
  0x36   :  { %v133_v48 = vadd.f32 %v132_v18, %v123_v40  ;;  %v116_v49 = vadd.f32 %v115_v35, %v106_v41  ;;  %v145_v52 = vmul.f32 %v144_v42, %v140_v23  ;;  %v108_v53 = vmul.f32 %v107_v46, %v308_v2 }
  0x37   :  { %v127_v54 = vstv %s357_s13  ;;  %v99_v57 = vadd.f32 %v98_v51, %v89_v50  ;;  %v118_v58 = vmul.f32 %v117_v47, %v317_v5  ;;  %v155_v59 = vmul.f32 %v154_v43, %v150_v24 }
  0x38   :  { %v143_v55 = vadd.f32 %v142_v36, %v133_v48  ;;  %v126_v56 = vadd.f32 %v125_v38, %v116_v49  ;;  %v137_v60 = vstv %s372_s15  ;;  %v128_v0 = vmul.f32 %v127_v54, %v322_v6 }
  0x39   :  { %v109_v63 = vadd.f32 %v108_v53, %v99_v57  ;;  %v147_v3 = vstv %s378_s3  ;;  %v138_v4 = vmul.f32 %v137_v60, %v334_v11  ;;  %v157_v7 = vstv %s382_s16 }
  0x3a   :  { %v153_v61 = vadd.f32 %v152_v37, %v143_v55  ;;  %v136_v62 = vadd.f32 %v135_v39, %v126_v56  ;;  %v148_v9 = vmul.f32 %v147_v3, %v140_v23  ;;  %v158_v10 = vmul.f32 %v157_v7, %v150_v24 }
  0x3b   :  { %v119_v2 = vadd.f32 %v118_v58, %v109_v63 }
  0x3c   :  { %161 = vst.msk [vmem:[%s416_s6] sm:$0xff] %vm160_vm0, %v153_v61  ;;  %v146_v1 = vadd.f32 %v145_v52, %v136_v62 }
  0x3d   :  { %v129_v8 = vadd.f32 %v128_v0, %v119_v2 }
  0x3e   :  { %v156_v5 = vadd.f32 %v155_v59, %v146_v1 }
  0x3f   :  { %v139_v6 = vadd.f32 %v138_v4, %v129_v8 }
  0x40   :  { %162 = vst.msk [vmem:[%s416_s6 + $0x8] sm:$0xff] %vm160_vm0, %v156_v5 }
  0x41   :  { %v149_v12 = vadd.f32 %v148_v9, %v139_v6 }
  0x43   :  { %v159_v13 = vadd.f32 %v158_v10, %v149_v12 }
  0x45   :  { %163 = vst.msk [vmem:[%s416_s6 + $0x10] sm:$0xff] %vm160_vm0, %v159_v13 }
  0x46   :  { %168 = vsyncpa [#allocation3], 1 }
  0x47   :  { %169 = vsyncpa [#allocation5], 1 }

</bundles_post_ra>
